<compile_context>
chip_gen: v5e
topology: v5e:2x2
jax: 0.10.0
libtpu: 0.0.40
codegen_flags: <defaults>
</compile_context>

<pallas_src>
import functools

import jax
import jax.numpy as jnp
from jax import lax
from jax.experimental import pallas as pl
from jax.experimental.pallas import tpu as pltpu

LANE = 128


def _round_up(x, m):
    return (x + m - 1) // m * m


def _block_geom(f_in, c_in, c_out, kernel, stride):
    kh, kw = kernel
    sh, sw = stride
    f_pad = f_in + 2                                    # torch F.pad freq (1, 1)
    f_out = (f_pad - kw) // sw + 1
    fc = f_out * c_out
    return dict(kernel=kernel, stride=stride, f_in=f_in, f_pad=f_pad, f_out=f_out,
                c_in=c_in, c_out=c_out, fc=fc, fc_pad=_round_up(fc, LANE),
                k_dim=kh * f_pad * c_in)


def _geometry(cfg):
    c0, c1 = cfg["channels"]
    g0 = _block_geom(cfg["input_feat_size"], 1, c0, cfg["kernels"][0], cfg["strides"][0])
    g1 = _block_geom(g0["f_out"], c0, c1, cfg["kernels"][1], cfg["strides"][1])
    return g0, g1


# ------------------------ one-time parameter preparation ---------------------


def _toeplitz_weight(w_oihw, scale, g):
    """Toeplitz conv-as-matmul weight [kh*F_pad*C_in, FC_pad] (bf16) + padded per-lane scale."""
    kh, kw = g["kernel"]
    _, sw = g["stride"]
    f_pad, f_out = g["f_pad"], g["f_out"]
    c_in, c_out = g["c_in"], g["c_out"]
    fc, fc_pad, k_dim = g["fc"], g["fc_pad"], g["k_dim"]

    w_hwio = jnp.transpose(jnp.asarray(w_oihw, jnp.float32), (2, 3, 1, 0))   # [KH,KW,Cin,Cout]
    wmat = jnp.zeros((kh, f_pad, c_in, f_out, c_out), jnp.float32)
    for j in range(kw):
        for f in range(f_out):
            wmat = wmat.at[:, f * sw + j, :, f, :].set(w_hwio[:, j, :, :])
    wmat = wmat.reshape(k_dim, fc)
    wmat = jnp.pad(wmat, ((0, 0), (0, fc_pad - fc))).astype(jnp.bfloat16)

    scale_fc = jnp.tile(jnp.asarray(scale, jnp.float32).reshape(1, c_out), (1, f_out))
    scale_fc = jnp.pad(scale_fc, ((0, 0), (0, fc_pad - fc)))   # pad lanes -> 0 -> zero outputs
    return wmat, scale_fc


def prepare_params(raw, cfg):
    """Runs once, eagerly (outside jit): all weight layout work happens here."""
    g0, g1 = _geometry(cfg)
    wmat0, scale0_fc = _toeplitz_weight(raw["w0"], raw["scale0"], g0)
    wmat1, scale1_fc = _toeplitz_weight(raw["w1"], raw["scale1"], g1)
    h = cfg["hidden_size"]
    h_pad = _round_up(h, LANE)
    wp = jnp.asarray(raw["w_proj_t"], jnp.float32)                          # [F1*C1, hidden]
    wp = jnp.pad(wp, ((0, g1["fc_pad"] - g1["fc"]), (0, h_pad - h))).astype(jnp.bfloat16)
    return dict(wmat0=wmat0, scale0_fc=scale0_fc,
                wmat1=wmat1, scale1_fc=scale1_fc, w_proj_pad=wp)


# ------------------------------- Pallas kernel --------------------------------


def _sscp_block_kernel(*refs, fc, eps, t_chunk, project):
    """Fused conv (Toeplitz matmul) + cumulative group norm + ReLU [+ projection]."""
    if project:
        x_ref, w_ref, scale_ref, proj_ref, out_ref, cs_ref, cq_ref = refs
    else:
        x_ref, w_ref, scale_ref, out_ref, cs_ref, cq_ref = refs
        proj_ref = None

    chunk = pl.program_id(1)

    # Reset the carried cumulative (sum, sum-sq) at the start of each batch row's time sweep.
    # NOTE: a partial last time chunk feeds garbage tail rows into the carry; this is safe only
    # because the remainder chunk is always last for its batch row and the carry resets here.
    @pl.when(chunk == 0)
    def _():
        cs_ref[...] = jnp.zeros_like(cs_ref)
        cq_ref[...] = jnp.zeros_like(cq_ref)

    x = x_ref[0]                        # [Tc, kh*F_pad*C_in]   bf16
    w = w_ref[...]                      # [kh*F_pad*C_in, FC_pad] bf16 (pad cols are zero)
    conv = jnp.dot(x, w, preferred_element_type=jnp.float32)     # [Tc, FC_pad] f32, one MXU pass

    # Lower-triangular (incl. diag) scan matrix, built in-registers.
    row = lax.broadcasted_iota(jnp.int32, (t_chunk, t_chunk), 0)
    col = lax.broadcasted_iota(jnp.int32, (t_chunk, t_chunk), 1)
    tri = (col <= row).astype(jnp.float32)

    # Cumulative element counts for the global time indices covered by this chunk.
    t0 = chunk * t_chunk
    tloc = lax.broadcasted_iota(jnp.int32, (t_chunk, 1), 0)
    cnt = jnp.maximum(((t0 + tloc + 1) * fc).astype(jnp.float32), 1.0)      # [Tc, 1]

    # Per-time-step sums (pad lanes contribute 0 since their weight columns are zero).
    s = jnp.sum(conv, axis=1, keepdims=True)                                # [Tc, 1]
    ss = jnp.sum(conv * conv, axis=1, keepdims=True)                        # [Tc, 1]

    cum_s = cs_ref[...] + jnp.dot(tri, s, preferred_element_type=jnp.float32)
    mean = cum_s / cnt                                                       # [Tc, 1]

    # q_t = sum_fc (x_t - mean_t)^2 over the *real* lanes, via the sum-of-squares identity
    # (clamped >= 0 against f32 cancellation).  Keep all cumulative stats in f32.
    q = jnp.maximum(ss - 2.0 * mean * s + float(fc) * mean * mean, 0.0)
    cum_q = cq_ref[...] + jnp.dot(tri, q, preferred_element_type=jnp.float32)
    var = cum_q / cnt

    y = (conv - mean) * lax.rsqrt(var + eps) * scale_ref[...]               # pad lanes -> 0
    y = jnp.maximum(y, 0.0)                                                 # ReLU

    if project:
        # Fused final Linear: [Tc, FC_pad] @ [FC_pad, H_pad], bf16 operands, f32 accumulate.
        out_ref[0] = jnp.dot(y.astype(jnp.bfloat16), proj_ref[...],
                             preferred_element_type=jnp.float32).astype(out_ref.dtype)
    else:
        out_ref[0] = y.astype(out_ref.dtype)                                # lane-dense store

    # Carry cumulative totals through the end of this chunk to the next one.
    cs_ref[...] = cum_s[t_chunk - 1:t_chunk, :]
    cq_ref[...] = cum_q[t_chunk - 1:t_chunk, :]


def sscp_conv_block(x_nhwc, wmat, scale_fc, w_proj, *, geom, eps, time_chunk, out_dtype):
    """One AudioSSCPConvBlock (+ optional fused output projection).

    x_nhwc: [B, T, F, C_in]; wmat/scale_fc/w_proj from prepare_params.
    Returns (y, t_out): y is [B, T_out, FC_pad] (bf16) or, with w_proj, [B, T_out, H_pad].
    """
    b, t_in, _, c_in = x_nhwc.shape
    kh, _ = geom["kernel"]
    sh, _ = geom["stride"]
    f_pad, fc, fc_pad, k_dim = geom["f_pad"], geom["fc"], geom["fc_pad"], geom["k_dim"]

    # torch F.pad(NCHW, (1, 1, 0, kh-1)): freq padded (1, 1), time padded (0, kh-1).
    xp = jnp.pad(x_nhwc, ((0, 0), (0, kh - 1), (1, 1), (0, 0)))
    t_pad = t_in + kh - 1
    t_out = (t_pad - kh) // sh + 1

    # Time-tap unroll (kh strided slabs) -> [B, T_out, kh*F_pad*C_in]; freq handled by Toeplitz W.
    # TODO(synk): avoid this HBM round trip (pl.ANY input + in-kernel halo DMA / strided pl.ds).
    xp_flat = xp.reshape(b, t_pad, f_pad * c_in)
    slabs = [xp_flat[:, i:i + (t_out - 1) * sh + 1:sh, :] for i in range(kh)]
    xcat = jnp.concatenate(slabs, axis=-1).astype(jnp.bfloat16)

    tc = min(t_out, time_chunk)
    n_tc = pl.cdiv(t_out, tc)
    project = w_proj is not None
    n_out = w_proj.shape[1] if project else fc_pad

    in_specs = [
        pl.BlockSpec((1, tc, k_dim), lambda i, c: (i, c, 0)),
        pl.BlockSpec((k_dim, fc_pad), lambda i, c: (0, 0)),     # grid-invariant (fetched once)
        pl.BlockSpec((1, fc_pad), lambda i, c: (0, 0)),
    ]
    args = [xcat, wmat, scale_fc]
    if project:
        in_specs.append(pl.BlockSpec((fc_pad, n_out), lambda i, c: (0, 0)))
        args.append(w_proj)

    kernel_fn = functools.partial(_sscp_block_kernel, fc=fc, eps=eps, t_chunk=tc,
                                  project=project)
    y = pl.pallas_call(
        kernel_fn,
        out_shape=jax.ShapeDtypeStruct((b, t_out, n_out), out_dtype),
        grid_spec=pltpu.PrefetchScalarGridSpec(
            num_scalar_prefetch=0,
            grid=(b, n_tc),
            in_specs=in_specs,
            out_specs=pl.BlockSpec((1, tc, n_out), lambda i, c: (i, c, 0)),
            scratch_shapes=[pltpu.VMEM((1, 1), jnp.float32),
                            pltpu.VMEM((1, 1), jnp.float32)],
        ),
        compiler_params=pltpu.CompilerParams(
            dimension_semantics=("parallel", "arbitrary")),
    )(*args)
    return y, t_out


# --------------------------------- JAX glue -----------------------------------


def audio_subsample_conv_projection(audio, params, *, cfg, time_chunk=256):
    """audio: [B, T, F]. params: output of prepare_params. Returns [B, T_out, hidden]."""
    eps = cfg["eps"]
    g0, g1 = _geometry(cfg)
    b = audio.shape[0]

    x = audio[..., None].astype(jnp.float32)                  # unsqueeze(1) -> NHWC [B, T, F, 1]
    y0, t0 = sscp_conv_block(x, params["wmat0"], params["scale0_fc"], None,
                             geom=g0, eps=eps, time_chunk=time_chunk, out_dtype=jnp.bfloat16)
    # Drop the FC lane padding and restore [B, T0, F0, C0] for block 2.
    x1 = y0[:, :, :g0["fc"]].reshape(b, t0, g0["f_out"], g0["c_out"])

    # Block 2 has the final Linear fused into its epilogue (output already [B, T1, H_pad]).
    y1, _ = sscp_conv_block(x1, params["wmat1"], params["scale1_fc"], params["w_proj_pad"],
                            geom=g1, eps=eps, time_chunk=time_chunk, out_dtype=jnp.float32)
    return y1[:, :, :cfg["hidden_size"]]


# ----------------------- pure-JAX reference (for checking) --------------------


def pad_and_extract_patches(x, kh, kw, sh, sw):
    xp = jnp.pad(x, ((0, 0), (0, kh - 1), (1, 1), (0, 0)))
    _, t_pad, f_pad, _ = xp.shape
    t_out = (t_pad - kh) // sh + 1
    f_out = (f_pad - kw) // sw + 1
    cols = []
    for i in range(kh):
        for j in range(kw):
            cols.append(xp[:, i:i + (t_out - 1) * sh + 1:sh,
                           j:j + (f_out - 1) * sw + 1:sw, :])
    patches = jnp.concatenate(cols, axis=-1)
    return patches.reshape(x.shape[0], t_out * f_out, -1), t_out, f_out


def _ref_cumulative_group_norm(x, scale, eps):
    _, _, f, c = x.shape
    s = jnp.sum(x, axis=(2, 3), keepdims=True)
    cum_s = jnp.cumsum(s, axis=1)
    cnt = jnp.maximum(jnp.cumsum(jnp.full_like(s, float(f * c)), axis=1), 1.0)
    mean = cum_s / cnt
    ssq = jnp.sum((x - mean) ** 2, axis=(2, 3), keepdims=True)
    var = jnp.cumsum(ssq, axis=1) / cnt
    return (x - mean) * lax.rsqrt(var + eps) * scale.reshape(1, 1, 1, c)


def reference_forward(audio, raw, *, cfg):
    (kh0, kw0), (kh1, kw1) = cfg["kernels"]
    (sh0, sw0), (sh1, sw1) = cfg["strides"]
    eps = cfg["eps"]
    b = audio.shape[0]
    hp = lax.Precision.HIGHEST
    c0 = raw["w0"].shape[0]
    c1 = raw["w1"].shape[0]
    w0m = jnp.transpose(raw["w0"], (2, 3, 1, 0)).reshape(-1, c0)
    w1m = jnp.transpose(raw["w1"], (2, 3, 1, 0)).reshape(-1, c1)

    x = audio[..., None]
    p0, t0, f0 = pad_and_extract_patches(x, kh0, kw0, sh0, sw0)
    conv0 = jnp.einsum("bpk,kc->bpc", p0, w0m, precision=hp).reshape(b, t0, f0, c0)
    y0 = jnp.maximum(_ref_cumulative_group_norm(conv0, raw["scale0"], eps), 0.0)

    p1, t1, f1 = pad_and_extract_patches(y0, kh1, kw1, sh1, sw1)
    conv1 = jnp.einsum("bpk,kc->bpc", p1, w1m, precision=hp).reshape(b, t1, f1, c1)
    y1 = jnp.maximum(_ref_cumulative_group_norm(conv1, raw["scale1"], eps), 0.0)

    flat = y1.reshape(b, t1, f1 * c1)
    return jnp.einsum("btd,dh->bth", flat, raw["w_proj_t"], precision=hp)


# ------------------------------------ main -------------------------------------

if __name__ == "__main__":
    cfg = {
        "input_feat_size": 16,
        "channels": (8, 4),                 # sscp_conv_channel_size
        "kernels": ((3, 3), (3, 3)),        # sscp_conv_kernel_size
        "strides": ((2, 2), (2, 2)),        # sscp_conv_stride_size
        "eps": 1e-3,                        # sscp_conv_group_norm_eps
        "hidden_size": 32,
    }
    b, t_in, f_in = 2, 16, cfg["input_feat_size"]
    c0, c1 = cfg["channels"]
    hidden = cfg["hidden_size"]

    key = jax.random.PRNGKey(0)
    k_in, k_w0, k_w1, k_s0, k_s1, k_p = jax.random.split(key, 6)
    audio = jax.random.normal(k_in, (b, t_in, f_in), jnp.float32)

    # Conv weights in torch Conv2d layout [C_out, C_in, KH, KW].
    w0 = jax.random.normal(k_w0, (c0, 1, 3, 3), jnp.float32) * 0.3
    w1 = jax.random.normal(k_w1, (c1, c0, 3, 3), jnp.float32) * 0.2
    scale0 = 1.0 + 0.1 * jax.random.normal(k_s0, (c0,), jnp.float32)
    scale1 = 1.0 + 0.1 * jax.random.normal(k_s1, (c1,), jnp.float32)

    # Final Linear(in=f_out*c_out, hidden, bias=False): y = x @ W^T, W: [hidden, d_in].
    f = f_in
    for (kh, kw), (sh, sw) in zip(cfg["kernels"], cfg["strides"]):
        f = (f + 2 - kw) // sw + 1
    d_in = f * c1
    w_proj = jax.random.normal(k_p, (hidden, d_in), jnp.float32) * 0.1

    raw_params = {"w0": w0, "w1": w1, "scale0": scale0, "scale1": scale1,
                  "w_proj_t": w_proj.T}

    # One-time, out-of-jit parameter prep (Toeplitz weights, lane padding, bf16 casts).
    prepared = jax.tree_util.tree_map(jax.block_until_ready, prepare_params(raw_params, cfg))

    # time_chunk=256 targets v6e/v7x MXU M; use 128 on v5e.
    fwd = jax.jit(functools.partial(audio_subsample_conv_projection, cfg=cfg, time_chunk=256))
    out = jax.block_until_ready(fwd(audio, prepared))
    ref = jax.block_until_ready(reference_forward(audio, raw_params, cfg=cfg))

    assert out.shape == ref.shape == (b, 4, hidden), (out.shape, ref.shape)
    # Kernel uses native MXU (bf16 operands, f32 accumulation) + bf16 intermediates;
    # reference is f32 / HIGHEST, so allow bf16-level deviation (expected ~1e-2 max).
    max_err = float(jnp.max(jnp.abs(out - ref)))
    if max_err > 3e-2:
        raise AssertionError(f"Pallas output mismatch vs reference: max abs err {max_err}")
    print("KERNEL_OK")
</pallas_src>

<mosaic_0001>
module attributes {stable_mosaic.version = 11 : i64} {
  func.func @_sscp_block_kernel(%arg0: i32, %arg1: i32, %arg2: memref<1x4x240xbf16, #tpu.memory_space<vmem>>, %arg3: memref<240x128xbf16, #tpu.memory_space<vmem>>, %arg4: memref<1x128xf32, #tpu.memory_space<vmem>>, %arg5: memref<128x128xbf16, #tpu.memory_space<vmem>>, %arg6: memref<1x4x128xf32, #tpu.memory_space<vmem>>, %arg7: memref<1x1xf32, #tpu.memory_space<vmem>>, %arg8: memref<1x1xf32, #tpu.memory_space<vmem>>) attributes {dimension_semantics = [#tpu.dimension_semantics<parallel>, #tpu.dimension_semantics<arbitrary>], iteration_bounds = array<i64: 2, 1>, scalar_prefetch = 0 : i64, scratch_operands = 2 : i64, tpu.core_type = #tpu.core_type<tc>, window_params = [{transform_indices = @transform_0, window_bounds = array<i64: 1, 4, 240>}, {pipeline_mode = #tpu.pipeline_mode<synchronous>, transform_indices = @transform_1, window_bounds = array<i64: 240, 128>}, {pipeline_mode = #tpu.pipeline_mode<synchronous>, transform_indices = @transform_2, window_bounds = array<i64: 1, 128>}, {pipeline_mode = #tpu.pipeline_mode<synchronous>, transform_indices = @transform_3, window_bounds = array<i64: 128, 128>}, {transform_indices = @transform_4, window_bounds = array<i64: 1, 4, 128>}]} {
    %c0_i32 = arith.constant 0 : i32
    %0 = arith.cmpi eq, %arg1, %c0_i32 : i32
    %1 = arith.extui %0 : i1 to i32
    %c0_i32_0 = arith.constant 0 : i32
    %2 = arith.cmpi ne, %1, %c0_i32_0 : i32
    scf.if %2 {
      %cst_31 = arith.constant 0.000000e+00 : f32
      %70 = vector.broadcast %cst_31 : f32 to vector<1x1xf32>
      %c0_32 = arith.constant 0 : index
      %c0_33 = arith.constant 0 : index
      %71 = vector.load %arg7[%c0_32, %c0_33] : memref<1x1xf32, #tpu.memory_space<vmem>>, vector<1x1xf32>
      tpu.vector_store %arg7[%c0_32, %c0_33], %70 {strides = array<i32>} : memref<1x1xf32, #tpu.memory_space<vmem>>, vector<1x1xf32>,
      %cst_34 = arith.constant 0.000000e+00 : f32
      %72 = vector.broadcast %cst_34 : f32 to vector<1x1xf32>
      %c0_35 = arith.constant 0 : index
      %c0_36 = arith.constant 0 : index
      %73 = vector.load %arg8[%c0_35, %c0_36] : memref<1x1xf32, #tpu.memory_space<vmem>>, vector<1x1xf32>
      tpu.vector_store %arg8[%c0_35, %c0_36], %72 {strides = array<i32>} : memref<1x1xf32, #tpu.memory_space<vmem>>, vector<1x1xf32>,
    } else {
    }
    %c0 = arith.constant 0 : index
    %c0_1 = arith.constant 0 : index
    %c0_2 = arith.constant 0 : index
    %3 = vector.load %arg2[%c0, %c0_1, %c0_2] : memref<1x4x240xbf16, #tpu.memory_space<vmem>>, vector<1x4x240xbf16>
    %4 = vector.shape_cast %3 : vector<1x4x240xbf16> to vector<4x240xbf16>
    %c0_3 = arith.constant 0 : index
    %c0_4 = arith.constant 0 : index
    %5 = vector.load %arg3[%c0_3, %c0_4] : memref<240x128xbf16, #tpu.memory_space<vmem>>, vector<240x128xbf16>
    %cst = arith.constant dense<0.000000e+00> : vector<4x128xf32>
    %6 = tpu.matmul %4, %5, %cst {dimension_numbers = #tpu.dot_dimension_numbers<[1], [0], [0], [1], [0, 0, 1, 1], [], []>} : vector<4x240xbf16>, vector<240x128xbf16>, vector<4x128xf32> -> vector<4x128xf32>
    %7 = tpu.iota {dimensions = array<i32: 0>} : vector<4x4xi32>
    %8 = tpu.iota {dimensions = array<i32: 1>} : vector<4x4xi32>
    %9 = arith.cmpi sle, %8, %7 : vector<4x4xi32>
    %10 = arith.extui %9 : vector<4x4xi1> to vector<4x4xi32>
    %11 = arith.sitofp %10 : vector<4x4xi32> to vector<4x4xf32>
    %c4_i32 = arith.constant 4 : i32
    %12 = arith.muli %arg1, %c4_i32 : i32
    %13 = tpu.iota {dimensions = array<i32: 0>} : vector<4x1xi32>
    %14 = vector.broadcast %12 : i32 to vector<4x1xi32>
    %15 = arith.addi %14, %13 : vector<4x1xi32>
    %c1_i32 = arith.constant 1 : i32
    %16 = vector.broadcast %c1_i32 : i32 to vector<4x1xi32>
    %17 = arith.addi %15, %16 : vector<4x1xi32>
    %c16_i32 = arith.constant 16 : i32
    %18 = vector.broadcast %c16_i32 : i32 to vector<4x1xi32>
    %19 = arith.muli %17, %18 : vector<4x1xi32>
    %20 = arith.sitofp %19 : vector<4x1xi32> to vector<4x1xf32>
    %cst_5 = arith.constant 1.000000e+00 : f32
    %21 = vector.broadcast %cst_5 : f32 to vector<4x1xf32>
    %22 = arith.maximumf %20, %21 : vector<4x1xf32>
    %cst_6 = arith.constant dense<0.000000e+00> : vector<4xf32>
    %23 = vector.multi_reduction <add>, %6, %cst_6 [1] : vector<4x128xf32> to vector<4xf32>
    %24 = vector.shape_cast %23 : vector<4xf32> to vector<4x1xf32>
    %25 = arith.mulf %6, %6 : vector<4x128xf32>
    %cst_7 = arith.constant dense<0.000000e+00> : vector<4xf32>
    %26 = vector.multi_reduction <add>, %25, %cst_7 [1] : vector<4x128xf32> to vector<4xf32>
    %27 = vector.shape_cast %26 : vector<4xf32> to vector<4x1xf32>
    %c0_8 = arith.constant 0 : index
    %c0_9 = arith.constant 0 : index
    %28 = vector.load %arg7[%c0_8, %c0_9] : memref<1x1xf32, #tpu.memory_space<vmem>>, vector<1x1xf32>
    %cst_10 = arith.constant dense<0.000000e+00> : vector<4x1xf32>
    %29 = tpu.matmul %11, %24, %cst_10 {dimension_numbers = #tpu.dot_dimension_numbers<[1], [0], [0], [1], [0, 0, 1, 1], [], []>} : vector<4x4xf32>, vector<4x1xf32>, vector<4x1xf32> -> vector<4x1xf32>
    %30 = vector.broadcast %28 : vector<1x1xf32> to vector<4x1xf32>
    %31 = arith.addf %30, %29 : vector<4x1xf32>
    %32 = arith.divf %31, %22 : vector<4x1xf32>
    %cst_11 = arith.constant 2.000000e+00 : f32
    %33 = vector.broadcast %cst_11 : f32 to vector<4x1xf32>
    %34 = arith.mulf %33, %32 : vector<4x1xf32>
    %35 = arith.mulf %34, %24 : vector<4x1xf32>
    %36 = arith.subf %27, %35 : vector<4x1xf32>
    %cst_12 = arith.constant 1.600000e+01 : f32
    %37 = vector.broadcast %cst_12 : f32 to vector<4x1xf32>
    %38 = arith.mulf %37, %32 : vector<4x1xf32>
    %39 = arith.mulf %38, %32 : vector<4x1xf32>
    %40 = arith.addf %36, %39 : vector<4x1xf32>
    %cst_13 = arith.constant 0.000000e+00 : f32
    %41 = vector.broadcast %cst_13 : f32 to vector<4x1xf32>
    %42 = arith.maximumf %40, %41 : vector<4x1xf32>
    %c0_14 = arith.constant 0 : index
    %c0_15 = arith.constant 0 : index
    %43 = vector.load %arg8[%c0_14, %c0_15] : memref<1x1xf32, #tpu.memory_space<vmem>>, vector<1x1xf32>
    %cst_16 = arith.constant dense<0.000000e+00> : vector<4x1xf32>
    %44 = tpu.matmul %11, %42, %cst_16 {dimension_numbers = #tpu.dot_dimension_numbers<[1], [0], [0], [1], [0, 0, 1, 1], [], []>} : vector<4x4xf32>, vector<4x1xf32>, vector<4x1xf32> -> vector<4x1xf32>
    %45 = vector.broadcast %43 : vector<1x1xf32> to vector<4x1xf32>
    %46 = arith.addf %45, %44 : vector<4x1xf32>
    %47 = arith.divf %46, %22 : vector<4x1xf32>
    %48 = vector.broadcast %32 : vector<4x1xf32> to vector<4x128xf32>
    %49 = arith.subf %6, %48 : vector<4x128xf32>
    %cst_17 = arith.constant 1.000000e-03 : f32
    %50 = vector.broadcast %cst_17 : f32 to vector<4x1xf32>
    %51 = arith.addf %47, %50 : vector<4x1xf32>
    %52 = math.rsqrt %51 : vector<4x1xf32>
    %53 = vector.broadcast %52 : vector<4x1xf32> to vector<4x128xf32>
    %54 = arith.mulf %49, %53 : vector<4x128xf32>
    %c0_18 = arith.constant 0 : index
    %c0_19 = arith.constant 0 : index
    %55 = vector.load %arg4[%c0_18, %c0_19] : memref<1x128xf32, #tpu.memory_space<vmem>>, vector<1x128xf32>
    %56 = vector.broadcast %55 : vector<1x128xf32> to vector<4x128xf32>
    %57 = arith.mulf %54, %56 : vector<4x128xf32>
    %cst_20 = arith.constant 0.000000e+00 : f32
    %58 = vector.broadcast %cst_20 : f32 to vector<4x128xf32>
    %59 = arith.maximumf %57, %58 : vector<4x128xf32>
    %60 = arith.truncf %59 : vector<4x128xf32> to vector<4x128xbf16>
    %c0_21 = arith.constant 0 : index
    %c0_22 = arith.constant 0 : index
    %61 = vector.load %arg5[%c0_21, %c0_22] : memref<128x128xbf16, #tpu.memory_space<vmem>>, vector<128x128xbf16>
    %cst_23 = arith.constant dense<0.000000e+00> : vector<4x128xf32>
    %62 = tpu.matmul %60, %61, %cst_23 {dimension_numbers = #tpu.dot_dimension_numbers<[1], [0], [0], [1], [0, 0, 1, 1], [], []>} : vector<4x128xbf16>, vector<128x128xbf16>, vector<4x128xf32> -> vector<4x128xf32>
    %c0_24 = arith.constant 0 : index
    %c0_25 = arith.constant 0 : index
    %c0_26 = arith.constant 0 : index
    %63 = vector.load %arg6[%c0_24, %c0_25, %c0_26] : memref<1x4x128xf32, #tpu.memory_space<vmem>>, vector<1x4x128xf32>
    %64 = vector.shape_cast %63 : vector<1x4x128xf32> to vector<4x128xf32>
    %65 = vector.shape_cast %62 : vector<4x128xf32> to vector<1x4x128xf32>
    tpu.vector_store %arg6[%c0_24, %c0_25, %c0_26], %65 {strides = array<i32>} : memref<1x4x128xf32, #tpu.memory_space<vmem>>, vector<1x4x128xf32>,
    %66 = vector.extract_strided_slice %31 {offsets = [3, 0], sizes = [1, 1], strides = [1, 1]} : vector<4x1xf32> to vector<1x1xf32>
    %c0_27 = arith.constant 0 : index
    %c0_28 = arith.constant 0 : index
    %67 = vector.load %arg7[%c0_27, %c0_28] : memref<1x1xf32, #tpu.memory_space<vmem>>, vector<1x1xf32>
    tpu.vector_store %arg7[%c0_27, %c0_28], %66 {strides = array<i32>} : memref<1x1xf32, #tpu.memory_space<vmem>>, vector<1x1xf32>,
    %68 = vector.extract_strided_slice %46 {offsets = [3, 0], sizes = [1, 1], strides = [1, 1]} : vector<4x1xf32> to vector<1x1xf32>
    %c0_29 = arith.constant 0 : index
    %c0_30 = arith.constant 0 : index
    %69 = vector.load %arg8[%c0_29, %c0_30] : memref<1x1xf32, #tpu.memory_space<vmem>>, vector<1x1xf32>
    tpu.vector_store %arg8[%c0_29, %c0_30], %68 {strides = array<i32>} : memref<1x1xf32, #tpu.memory_space<vmem>>, vector<1x1xf32>,
    return
  }
  func.func @transform_0(%arg0: i32, %arg1: i32) -> (i32, i32, i32) {
    %c0_i32 = arith.constant 0 : i32
    %c0_i32_0 = arith.constant 0 : i32
    return %arg0, %arg1, %c0_i32 : i32, i32, i32
  }
  func.func @transform_1(%arg0: i32, %arg1: i32) -> (i32, i32) {
    %c0_i32 = arith.constant 0 : i32
    %c0_i32_0 = arith.constant 0 : i32
    %c0_i32_1 = arith.constant 0 : i32
    return %c0_i32, %c0_i32_0 : i32, i32
  }
  func.func @transform_2(%arg0: i32, %arg1: i32) -> (i32, i32) {
    %c0_i32 = arith.constant 0 : i32
    %c0_i32_0 = arith.constant 0 : i32
    %c0_i32_1 = arith.constant 0 : i32
    return %c0_i32, %c0_i32_0 : i32, i32
  }
  func.func @transform_3(%arg0: i32, %arg1: i32) -> (i32, i32) {
    %c0_i32 = arith.constant 0 : i32
    %c0_i32_0 = arith.constant 0 : i32
    %c0_i32_1 = arith.constant 0 : i32
    return %c0_i32, %c0_i32_0 : i32, i32
  }
  func.func @transform_4(%arg0: i32, %arg1: i32) -> (i32, i32, i32) {
    %c0_i32 = arith.constant 0 : i32
    %c0_i32_0 = arith.constant 0 : i32
    return %arg0, %arg1, %c0_i32 : i32, i32, i32
  }
}

module attributes {stable_mosaic.version = 11 : i64} {
  func.func @_sscp_block_kernel(%arg0: i32, %arg1: i32, %arg2: memref<1x8x54xbf16, #tpu.memory_space<vmem>>, %arg3: memref<54x128xbf16, #tpu.memory_space<vmem>>, %arg4: memref<1x128xf32, #tpu.memory_space<vmem>>, %arg5: memref<1x8x128xbf16, #tpu.memory_space<vmem>>, %arg6: memref<1x1xf32, #tpu.memory_space<vmem>>, %arg7: memref<1x1xf32, #tpu.memory_space<vmem>>) attributes {dimension_semantics = [#tpu.dimension_semantics<parallel>, #tpu.dimension_semantics<arbitrary>], iteration_bounds = array<i64: 2, 1>, scalar_prefetch = 0 : i64, scratch_operands = 2 : i64, tpu.core_type = #tpu.core_type<tc>, window_params = [{transform_indices = @transform_0, window_bounds = array<i64: 1, 8, 54>}, {pipeline_mode = #tpu.pipeline_mode<synchronous>, transform_indices = @transform_1, window_bounds = array<i64: 54, 128>}, {pipeline_mode = #tpu.pipeline_mode<synchronous>, transform_indices = @transform_2, window_bounds = array<i64: 1, 128>}, {transform_indices = @transform_3, window_bounds = array<i64: 1, 8, 128>}]} {
    %c0_i32 = arith.constant 0 : i32
    %0 = arith.cmpi eq, %arg1, %c0_i32 : i32
    %1 = arith.extui %0 : i1 to i32
    %c0_i32_0 = arith.constant 0 : i32
    %2 = arith.cmpi ne, %1, %c0_i32_0 : i32
    scf.if %2 {
      %cst_28 = arith.constant 0.000000e+00 : f32
      %68 = vector.broadcast %cst_28 : f32 to vector<1x1xf32>
      %c0_29 = arith.constant 0 : index
      %c0_30 = arith.constant 0 : index
      %69 = vector.load %arg6[%c0_29, %c0_30] : memref<1x1xf32, #tpu.memory_space<vmem>>, vector<1x1xf32>
      tpu.vector_store %arg6[%c0_29, %c0_30], %68 {strides = array<i32>} : memref<1x1xf32, #tpu.memory_space<vmem>>, vector<1x1xf32>,
      %cst_31 = arith.constant 0.000000e+00 : f32
      %70 = vector.broadcast %cst_31 : f32 to vector<1x1xf32>
      %c0_32 = arith.constant 0 : index
      %c0_33 = arith.constant 0 : index
      %71 = vector.load %arg7[%c0_32, %c0_33] : memref<1x1xf32, #tpu.memory_space<vmem>>, vector<1x1xf32>
      tpu.vector_store %arg7[%c0_32, %c0_33], %70 {strides = array<i32>} : memref<1x1xf32, #tpu.memory_space<vmem>>, vector<1x1xf32>,
    } else {
    }
    %c0 = arith.constant 0 : index
    %c0_1 = arith.constant 0 : index
    %c0_2 = arith.constant 0 : index
    %3 = vector.load %arg2[%c0, %c0_1, %c0_2] : memref<1x8x54xbf16, #tpu.memory_space<vmem>>, vector<1x8x54xbf16>
    %4 = vector.shape_cast %3 : vector<1x8x54xbf16> to vector<8x54xbf16>
    %c0_3 = arith.constant 0 : index
    %c0_4 = arith.constant 0 : index
    %5 = vector.load %arg3[%c0_3, %c0_4] : memref<54x128xbf16, #tpu.memory_space<vmem>>, vector<54x128xbf16>
    %cst = arith.constant dense<0.000000e+00> : vector<8x128xf32>
    %6 = tpu.matmul %4, %5, %cst {dimension_numbers = #tpu.dot_dimension_numbers<[1], [0], [0], [1], [0, 0, 1, 1], [], []>} : vector<8x54xbf16>, vector<54x128xbf16>, vector<8x128xf32> -> vector<8x128xf32>
    %7 = tpu.iota {dimensions = array<i32: 0>} : vector<8x8xi32>
    %8 = tpu.iota {dimensions = array<i32: 1>} : vector<8x8xi32>
    %9 = arith.cmpi sle, %8, %7 : vector<8x8xi32>
    %10 = arith.extui %9 : vector<8x8xi1> to vector<8x8xi32>
    %11 = arith.sitofp %10 : vector<8x8xi32> to vector<8x8xf32>
    %c8_i32 = arith.constant 8 : i32
    %12 = arith.muli %arg1, %c8_i32 : i32
    %13 = tpu.iota {dimensions = array<i32: 0>} : vector<8x1xi32>
    %14 = vector.broadcast %12 : i32 to vector<8x1xi32>
    %15 = arith.addi %14, %13 : vector<8x1xi32>
    %c1_i32 = arith.constant 1 : i32
    %16 = vector.broadcast %c1_i32 : i32 to vector<8x1xi32>
    %17 = arith.addi %15, %16 : vector<8x1xi32>
    %c64_i32 = arith.constant 64 : i32
    %18 = vector.broadcast %c64_i32 : i32 to vector<8x1xi32>
    %19 = arith.muli %17, %18 : vector<8x1xi32>
    %20 = arith.sitofp %19 : vector<8x1xi32> to vector<8x1xf32>
    %cst_5 = arith.constant 1.000000e+00 : f32
    %21 = vector.broadcast %cst_5 : f32 to vector<8x1xf32>
    %22 = arith.maximumf %20, %21 : vector<8x1xf32>
    %cst_6 = arith.constant dense<0.000000e+00> : vector<8xf32>
    %23 = vector.multi_reduction <add>, %6, %cst_6 [1] : vector<8x128xf32> to vector<8xf32>
    %24 = vector.shape_cast %23 : vector<8xf32> to vector<8x1xf32>
    %25 = arith.mulf %6, %6 : vector<8x128xf32>
    %cst_7 = arith.constant dense<0.000000e+00> : vector<8xf32>
    %26 = vector.multi_reduction <add>, %25, %cst_7 [1] : vector<8x128xf32> to vector<8xf32>
    %27 = vector.shape_cast %26 : vector<8xf32> to vector<8x1xf32>
    %c0_8 = arith.constant 0 : index
    %c0_9 = arith.constant 0 : index
    %28 = vector.load %arg6[%c0_8, %c0_9] : memref<1x1xf32, #tpu.memory_space<vmem>>, vector<1x1xf32>
    %cst_10 = arith.constant dense<0.000000e+00> : vector<8x1xf32>
    %29 = tpu.matmul %11, %24, %cst_10 {dimension_numbers = #tpu.dot_dimension_numbers<[1], [0], [0], [1], [0, 0, 1, 1], [], []>} : vector<8x8xf32>, vector<8x1xf32>, vector<8x1xf32> -> vector<8x1xf32>
    %30 = vector.broadcast %28 : vector<1x1xf32> to vector<8x1xf32>
    %31 = arith.addf %30, %29 : vector<8x1xf32>
    %32 = arith.divf %31, %22 : vector<8x1xf32>
    %cst_11 = arith.constant 2.000000e+00 : f32
    %33 = vector.broadcast %cst_11 : f32 to vector<8x1xf32>
    %34 = arith.mulf %33, %32 : vector<8x1xf32>
    %35 = arith.mulf %34, %24 : vector<8x1xf32>
    %36 = arith.subf %27, %35 : vector<8x1xf32>
    %cst_12 = arith.constant 6.400000e+01 : f32
    %37 = vector.broadcast %cst_12 : f32 to vector<8x1xf32>
    %38 = arith.mulf %37, %32 : vector<8x1xf32>
    %39 = arith.mulf %38, %32 : vector<8x1xf32>
    %40 = arith.addf %36, %39 : vector<8x1xf32>
    %cst_13 = arith.constant 0.000000e+00 : f32
    %41 = vector.broadcast %cst_13 : f32 to vector<8x1xf32>
    %42 = arith.maximumf %40, %41 : vector<8x1xf32>
    %c0_14 = arith.constant 0 : index
    %c0_15 = arith.constant 0 : index
    %43 = vector.load %arg7[%c0_14, %c0_15] : memref<1x1xf32, #tpu.memory_space<vmem>>, vector<1x1xf32>
    %cst_16 = arith.constant dense<0.000000e+00> : vector<8x1xf32>
    %44 = tpu.matmul %11, %42, %cst_16 {dimension_numbers = #tpu.dot_dimension_numbers<[1], [0], [0], [1], [0, 0, 1, 1], [], []>} : vector<8x8xf32>, vector<8x1xf32>, vector<8x1xf32> -> vector<8x1xf32>
    %45 = vector.broadcast %43 : vector<1x1xf32> to vector<8x1xf32>
    %46 = arith.addf %45, %44 : vector<8x1xf32>
    %47 = arith.divf %46, %22 : vector<8x1xf32>
    %48 = vector.broadcast %32 : vector<8x1xf32> to vector<8x128xf32>
    %49 = arith.subf %6, %48 : vector<8x128xf32>
    %cst_17 = arith.constant 1.000000e-03 : f32
    %50 = vector.broadcast %cst_17 : f32 to vector<8x1xf32>
    %51 = arith.addf %47, %50 : vector<8x1xf32>
    %52 = math.rsqrt %51 : vector<8x1xf32>
    %53 = vector.broadcast %52 : vector<8x1xf32> to vector<8x128xf32>
    %54 = arith.mulf %49, %53 : vector<8x128xf32>
    %c0_18 = arith.constant 0 : index
    %c0_19 = arith.constant 0 : index
    %55 = vector.load %arg4[%c0_18, %c0_19] : memref<1x128xf32, #tpu.memory_space<vmem>>, vector<1x128xf32>
    %56 = vector.broadcast %55 : vector<1x128xf32> to vector<8x128xf32>
    %57 = arith.mulf %54, %56 : vector<8x128xf32>
    %cst_20 = arith.constant 0.000000e+00 : f32
    %58 = vector.broadcast %cst_20 : f32 to vector<8x128xf32>
    %59 = arith.maximumf %57, %58 : vector<8x128xf32>
    %60 = arith.truncf %59 : vector<8x128xf32> to vector<8x128xbf16>
    %c0_21 = arith.constant 0 : index
    %c0_22 = arith.constant 0 : index
    %c0_23 = arith.constant 0 : index
    %61 = vector.load %arg5[%c0_21, %c0_22, %c0_23] : memref<1x8x128xbf16, #tpu.memory_space<vmem>>, vector<1x8x128xbf16>
    %62 = vector.shape_cast %61 : vector<1x8x128xbf16> to vector<8x128xbf16>
    %63 = vector.shape_cast %60 : vector<8x128xbf16> to vector<1x8x128xbf16>
    tpu.vector_store %arg5[%c0_21, %c0_22, %c0_23], %63 {strides = array<i32>} : memref<1x8x128xbf16, #tpu.memory_space<vmem>>, vector<1x8x128xbf16>,
    %64 = vector.extract_strided_slice %31 {offsets = [7, 0], sizes = [1, 1], strides = [1, 1]} : vector<8x1xf32> to vector<1x1xf32>
    %c0_24 = arith.constant 0 : index
    %c0_25 = arith.constant 0 : index
    %65 = vector.load %arg6[%c0_24, %c0_25] : memref<1x1xf32, #tpu.memory_space<vmem>>, vector<1x1xf32>
    tpu.vector_store %arg6[%c0_24, %c0_25], %64 {strides = array<i32>} : memref<1x1xf32, #tpu.memory_space<vmem>>, vector<1x1xf32>,
    %66 = vector.extract_strided_slice %46 {offsets = [7, 0], sizes = [1, 1], strides = [1, 1]} : vector<8x1xf32> to vector<1x1xf32>
    %c0_26 = arith.constant 0 : index
    %c0_27 = arith.constant 0 : index
    %67 = vector.load %arg7[%c0_26, %c0_27] : memref<1x1xf32, #tpu.memory_space<vmem>>, vector<1x1xf32>
    tpu.vector_store %arg7[%c0_26, %c0_27], %66 {strides = array<i32>} : memref<1x1xf32, #tpu.memory_space<vmem>>, vector<1x1xf32>,
    return
  }
  func.func @transform_0(%arg0: i32, %arg1: i32) -> (i32, i32, i32) {
    %c0_i32 = arith.constant 0 : i32
    %c0_i32_0 = arith.constant 0 : i32
    return %arg0, %arg1, %c0_i32 : i32, i32, i32
  }
  func.func @transform_1(%arg0: i32, %arg1: i32) -> (i32, i32) {
    %c0_i32 = arith.constant 0 : i32
    %c0_i32_0 = arith.constant 0 : i32
    %c0_i32_1 = arith.constant 0 : i32
    return %c0_i32, %c0_i32_0 : i32, i32
  }
  func.func @transform_2(%arg0: i32, %arg1: i32) -> (i32, i32) {
    %c0_i32 = arith.constant 0 : i32
    %c0_i32_0 = arith.constant 0 : i32
    %c0_i32_1 = arith.constant 0 : i32
    return %c0_i32, %c0_i32_0 : i32, i32
  }
  func.func @transform_3(%arg0: i32, %arg1: i32) -> (i32, i32, i32) {
    %c0_i32 = arith.constant 0 : i32
    %c0_i32_0 = arith.constant 0 : i32
    return %arg0, %arg1, %c0_i32 : i32, i32, i32
  }
}

</mosaic_0001>

<bundles_post_ra>
// kernel: audio_subsample_conv_projection.3
= control target key start
LH: loop header
LB: loop body
LE: loop exit
PB: predicated region body
PF: predicated region fallthrough
CT: control target
= control target key end

     0   :  { %9 = vsyncpa [#allocation5], 0  ;;  %s1187_s0 = inlined_call_operand.vmem [shape: bf16[2,4,240], index: 0, kind: input, shape index: {}]   ;;  %s1188_s1 = inlined_call_operand.vmem [shape: bf16[240,128], index: 1, kind: input, shape index: {}]   ;;  %s1189_s2 = inlined_call_operand.vmem [shape: f32[1,128], index: 2, kind: input, shape index: {}]   ;;  %s1190_s3 = inlined_call_operand.vmem [shape: bf16[128,128], index: 3, kind: input, shape index: {}]   ;;  %s1191_s4 = inlined_call_operand.hbm [shape: f32[2,4,128], index: 4, kind: output, shape index: {}]  }
   0x1   :  { %11 = vsyncpa [#allocation5 + $0x1], 0  ;;  %s1004_s15 = smov 0   ;;  %s1006_s16 = smov 0  }
   0x2   :  { %s1008_s17 = smov 0   ;;  %s1010_s18 = smov 0  }
   0x3   :  { %s1012_s19 = smov 0   ;;  %s1014_s20 = smov 0  }
   0x4 LB: > { %s697_s21 = sadd.s32 4294967295, %s975_s20   ;;  %s698_s22 = sadd.s32 4294967294, %s975_s20   ;;  %s975_s20 = sphi %s1014_s20, %s17_s20   ;;  %s971_s19 = sphi %s1012_s19, %s1198_s19   ;;  %s967_s18 = sphi %s1010_s18, %s1197_s18   ;;  %s963_s17 = sphi %s1008_s17, %s1196_s17   ;;  %s959_s16 = sphi %s1006_s16, %s1195_s16   ;;  %s955_s15 = sphi %s1004_s15, %s1194_s15  }
   0x5   : > { %s29_s23 = sadd.s32 1, %s971_s19  ;;  %s129_s24 = sadd.s32 1, %s963_s17 }
   0x6   : > { %p31_p0 = scmp.ge.s32.totalorder %s29_s23, 2  ;;  %p139_p1 = scmp.ne.s32.totalorder %s963_s17, %s959_s16 }
   0x7   : > { %p140_p2 = scmp.eq.s32.totalorder %s697_s21, 1  ;;  %p145_p3 = scmp.ne.s32.totalorder %s959_s16, %s955_s15 }
   0x8   : > { %s1200_s23 = smov (%p31_p0, %s29_s23), 0  ;;  %p146_p5 = scmp.eq.s32.totalorder %s698_s22, 1 }
   0x9   : > { %p1044_p4 = por %p140_p2, %p139_p1  ;;  %s124_s26 = ssub.s32 %s971_s19, %s1200_s23 }
   0xa   : > { %p701_p6 = scmp.ge.s32.totalorder %s975_s20, 1  ;;  %p127_p7 = scmp.eq.s32.totalorder %s124_s26, 0 }
   0xb   : > { %p1051_p8 = por %p146_p5, %p145_p3  ;;  %p185_p9 = scmp.lt.s32.totalorder %s975_s20, 3 }
   0xc   : > { %s1057_s28 = scalar_select %p127_p7, %s963_s17, %s129_s24  }
   0xd   : > { %p186_p10 = pnand %p701_p6, %p185_p9 }
   0xe   : > { %p215_p11 = scmp.lt.s32.totalorder (!%p186_p10), %s967_s18, 1  ;;  %s212_s8 = sand.u32 (!%p186_p10), 1, %s959_s16  }
   0xf   : > { %189 = sbr.rel (%p186_p10) target bundleno = 864 (0x360), region = 36  ;;  %s804_s9 = sshll.u32 (!%p186_p10), %s967_s18, 2 }
  0x10   : > { %s702_s10 = sshll.u32 (!%p186_p10), %s212_s8, 2  ;;  %s615_s13 = scalar_lea.hbm (!%p186_p10), %s1191_s4, %s804_s9 }
  0x11   : > { %s214_s14 = scalar_lea.vmem (!%p186_p10), [#allocation4], %s702_s10  ;;  %s619_s22 = sshll.u32 (!%p186_p10), %s615_s13, 4  ;;  %s620_s22 = int_to_ptr.hbm [resolvable:$true] %s619_s22 }
  0x12   : > { %s604_s24 = scalar_lea.sflag (!%p186_p10), [#allocation5], %s212_s8  ;;  %s911_s26 = sshra.s32 (!%p186_p10), %s620_s22, 4  ;;  %s912_s26 = int_to_ptr.hbm [resolvable:$true] %s911_s26 }
  0x13   : > { %s913_s29 = scalar_lea.hbm (!%p186_p10), %s912_s26, 4  ;;  %s917_s5 = scalar_lea.hbm (!%p186_p10), %s1191_s4, 8 }
  0x14   : > { %v815_v0 = vld [vmem:[%s1188_s1 + $0x38] sm:$0xff]  ;;  %v822_v1 = vld [vmem:[%s1188_s1 + $0x70] sm:$0xff]  ;;  %v821_v3 = vld [vmem:[%s1188_s1 + $0x68] sm:$0xff]  ;;  %s216_s11 = scalar_select %p215_p11, %s967_s18, 1  ;;  %vm358_vm0 = vcmask 916480   ;;  %vm401_vm1 = vcmask 1043456   ;;  %v387_v27 = vlaneseq }
  0x15   : > { %361 = vmatpush.bf16.msra.mxu0 %v815_v0  ;;  %375 = vmatpush.bf16.msra.mxu1 %v822_v1  ;;  %v814_v2 = vld [vmem:[%s1188_s1 + $0x30] sm:$0xff]  ;;  %v813_v4 = vld [vmem:[%s1188_s1 + $0x28] sm:$0xff]  ;;  %v820_v5 = vld [vmem:[%s1188_s1 + $0x60] sm:$0xff]  ;;  %vm229_vm2 = vcmask 0   ;;  %v977_v26 = vmov 0.0   ;;  %vm410_vm4 = vcmask 31744   ;;  %p914_p12 = scmp.ne.s32.totalorder %s912_s26, %s913_s29  ;;  %p918_p1 = scmp.lt.s32.totalorder %s912_s26, %s1191_s4 }
  0x16   : > { %s807_s12 = sshll.u32 %s216_s11, 2  ;;  %v812_v7 = vld [vmem:[%s1188_s1 + $0x20] sm:$0xff]  ;;  %v819_v8 = vld [vmem:[%s1188_s1 + $0x58] sm:$0xff]  ;;  %v818_v10 = vld [vmem:[%s1188_s1 + $0x50] sm:$0xff]  ;;  %230 = vst.msk [vmem:[#allocation2] sm:$0x1] %vm229_vm2, %v977_v26  ;;  %p919_p2 = scmp.lt.s32.totalorder %s917_s5, %s913_s29 }
  0x17   : > { %s223_s21 = scalar_lea.vmem %s1187_s0, %s807_s12  ;;  %v811_v9 = vld [vmem:[%s1188_s1 + $0x18] sm:$0xff]  ;;  %v810_v11 = vld [vmem:[%s1188_s1 + $0x10] sm:$0xff]  ;;  %v817_v12 = vld [vmem:[%s1188_s1 + $0x48] sm:$0xff]  ;;  %231 = vst.msk [vmem:[#allocation3] sm:$0x1] %vm229_vm2, %v977_v26  ;;  %v388_v28 = vshrl.u32 %v387_v27, 7  ;;  %p915_p13 = pnand %p914_p12, %p1044_p4 }
  0x18   : > { %v232_v6 = vld [vmem:[%s223_s21] sm:$0xf]  ;;  %v809_v13 = vld [vmem:[%s1188_s1 + $0x8] sm:$0xff]  ;;  %v390_v29 = vand.u32 127, %v387_v27  ;;  %v978_v36 = vmov 0   ;;  %vm600_vm9 = vcmask 3075   ;;  %p920_p3 = por %p919_p2, %p918_p1 }
  0x19   : > { %362 = vmatpush.bf16.msra.mxu0 %v814_v2  ;;  %376 = vmatpush.bf16.msra.mxu1 %v821_v3  ;;  %264 = vst [vmem:[#allocation1] ss:$4 sm:$0xff] %v232_v6  ;;  %v816_v14 = vld [vmem:[%s1188_s1 + $0x40] sm:$0xff]  ;;  %v397_v32 = vadd.s32 1, %v388_v28  ;;  %v830_v59 = vld [vmem:[%s1190_s3 + $0x38] sm:$0xff]  ;;  %v829_v60 = vld [vmem:[%s1190_s3 + $0x30] sm:$0xff]  ;;  %p916_p0 = pneg %p915_p13 }
  0x1a   : > { %v808_v16 = vld [vmem:[%s1188_s1] sm:$0xff]  ;;  %vm391_vm3 = vcmp.le.s32.totalorder %v390_v29, %v388_v28  ;;  %888 = vset.pattern.permute.xlu1 %v978_v36  ;;  %889 = vset.pattern.permute.xlu0 %v978_v36  ;;  %v828_v62 = vld [vmem:[%s1190_s3 + $0x28] sm:$0xff]  ;;  %s617_s21 = sshll.u32 %s214_s14, 4  ;;  %s618_s21 = int_to_ptr.vmem [resolvable:$true] %s617_s21 }
  0x1b   : > { %v766_v30 = vsel %vm391_vm3, 1.0, %v977_v26  ;;  %v398_v33 = vmul.u32 16, %v397_v32  ;;  %586 = vmatpush.bf16.msra.mxu2 %v830_v59  ;;  %v827_v2 = vld [vmem:[%s1190_s3 + $0x20] sm:$0xff]  ;;  %p921_p5 = pnand %p920_p3, %p916_p0 }
  0x1d   : > { %363 = vmatpush.bf16.msra.mxu0 %v813_v4  ;;  %377 = vmatpush.bf16.msra.mxu1 %v820_v5  ;;  %v399_v34 = vcvt.s32.f32 %v398_v33  ;;  %v890_v45 = vld [vmem:[#allocation2] ss:$0 sm:$0xff]  ;;  %v826_v4 = vld [vmem:[%s1190_s3 + $0x18] sm:$0xff]  ;;  %v825_v5 = vld [vmem:[%s1190_s3 + $0x10] sm:$0xff] }
  0x1e   : > { %v891_v61 = vld [vmem:[#allocation3] ss:$0 sm:$0xff] }
  0x1f   : > { %v400_v35 = vmax.f32 %v399_v34, 1.0  ;;  %587 = vmatpush.bf16.msra.mxu2 %v829_v60 }
  0x20   : > { %v266_v15 = vld.sshfl [vmem:[#allocation1 + $0x8] sm:$0xff pattern:$0x73625140]  ;;  %v265_v17 = vld.sshfl [vmem:[#allocation1] sm:$0xff pattern:$0x73625140] }
  0x21   : > { %364 = vmatpush.bf16.msra.mxu0 %v812_v7  ;;  %378 = vmatpush.bf16.msra.mxu1 %v819_v8  ;;  %893 = vrcp.f32 %v400_v35  ;;  %vm446_vm5 = vweird.f32 %v400_v35  ;;  %v452_v41 = vand.u32 2147483648, %v400_v35  ;;  %v450_v43 = vand.u32 2147483647, %v400_v35 }
  0x23   : > { %v453_v44 = vor.u32 1.1754944e-38, %v452_v41  ;;  %vm451_vm8 = vcmp.eq.f32.partialorder %v450_v43, 8.507059e+37  ;;  %588 = vmatpush.bf16.msra.mxu2 %v828_v62 }
  0x25   : > { %365 = vmatpush.bf16.msra.mxu0 %v811_v9  ;;  %379 = vmatpush.bf16.msra.mxu1 %v818_v10 }
  0x27   : > { %v894_v37 = vpop.eup %893  ;;  %589 = vmatpush.bf16.msra.mxu2 %v827_v2 }
  0x28   : > { %v442_v38 = vmul.f32 %v894_v37, %v400_v35  ;;  %vm447_vm6 = vweird.f32 %v894_v37 }
  0x29   : > { %366 = vmatpush.bf16.msra.mxu0 %v810_v11  ;;  %380 = vmatpush.bf16.msra.mxu1 %v817_v12  ;;  %vm448_vm7 = vmor %vm446_vm5, %vm447_vm6 }
  0x2a   : > { %v443_v39 = vsub.f32 1.0, %v442_v38 }
  0x2b   : > { %590 = vmatpush.bf16.msra.mxu2 %v826_v4 }
  0x2c   : > { %v444_v40 = vmul.f32 %v894_v37, %v443_v39 }
  0x2d   : > { %367 = vmatpush.bf16.msra.mxu0 %v809_v13  ;;  %381 = vmatpush.bf16.msra.mxu1 %v816_v14  ;;  %v824_v13 = vld [vmem:[%s1190_s3 + $0x8] sm:$0xff]  ;;  %v823_v14 = vld [vmem:[%s1190_s3] sm:$0xff] }
  0x2e   : > { %v445_v42 = vadd.f32 %v894_v37, %v444_v40 }
  0x2f   : > { %591 = vmatpush.bf16.msra.mxu2 %v825_v5 }
  0x30   : > { %765 = vmatmul.msk.bf16.vlgmr.msra.gmra.mxu1 %vm358_vm0, %v266_v15  ;;  %v449_v46 = vsel %vm448_vm7, %v894_v37, %v445_v42 }
  0x31   : > { %368 = vmatpush.bf16.msra.mxu0 %v808_v16  ;;  %v454_v48 = vsel %vm451_vm8, %v453_v44, %v449_v46 }
  0x33   : > { %592 = vmatpush.bf16.msra.mxu2 %v824_v13 }
  0x34   : > { %369 = vmatmul.bf16.vlgmr.msra.gmra.mxu0 %v265_v17  ;;  %v892_v17 = vld [vmem:[%s1189_s2] ss:$0 sm:$0xff] }
  0x37   : > { %593 = vmatpush.bf16.msra.mxu2 %v823_v14 }
  0xad   : > { %v383_v18 = vpop.f32.mrf.mxu1 }
  0xb1   : > { %v370_v19 = vpop.f32.mrf.mxu0 }
  0xb2   : > { %v1109_v20 = vadd.f32 %v383_v18, %v370_v19 }
  0xb4   : > { %v402_v21 = vsel %vm401_vm1, %v1109_v20, 0.0  ;;  %v405_v23 = vmul.f32 %v1109_v20, %v1109_v20 }
  0xb5   : > { %v385_v22 = vpop.f32.mrf.mxu1  ;;  %403 = vadd.xlane.f32.xlu0 %v402_v21 }
  0xb6   : > { %v406_v25 = vsel %vm401_vm1, %v405_v23, 0.0 }
  0xb9   : > { %v372_v24 = vpop.f32.mrf.mxu0 }
  0xbd   : > { %407 = vadd.xlane.f32.xlu0 %v406_v25 }
 0x128   : > { %v404_v31 = vpop.xlane.xlu0 %403 }
 0x129   : > { %767 = vmatpush.msk.msra.mxu3 %vm401_vm1, %v404_v31 }
 0x12a   : > { %768 = vmatmul.msk.f32.vlgmr.msra.gmra.mxu3 %vm410_vm4, %v766_v30 }
 0x130   : > { %v408_v54 = vpop.xlane.xlu0 %407 }
 0x1ad   : > { %v434_v47 = vpop.f32.mrf.mxu3 }
 0x1ae   : > { %v440_v49 = vadd.f32 %v890_v45, %v434_v47 }
 0x1b0   : > { %v455_v50 = vmul.f32 %v454_v48, %v440_v49  ;;  %601 = vst.msk [vmem:[#allocation2 - $0x3] sm:$0x8] %vm600_vm9, %v440_v49 }
 0x1b2   : > { %494 = vperm.xlu1 %888, %v455_v50   ;;  %v456_v51 = vmul.f32 2.0, %v455_v50  ;;  %v459_v52 = vmul.f32 16.0, %v455_v50 }
 0x1b4   : > { %v457_v53 = vmul.f32 %v456_v51, %v404_v31  ;;  %v460_v56 = vmul.f32 %v459_v52, %v455_v50 }
 0x1b6   : > { %v458_v55 = vsub.f32 %v408_v54, %v457_v53 }
 0x1b8   : > { %v461_v57 = vadd.f32 %v460_v56, %v458_v55 }
 0x1ba   : > { %v462_v58 = vmax.f32 %v461_v57, 0.0 }
 0x1bc   : > { %769 = vmatpush.msk.msrb.mxu3 %vm401_vm1, %v462_v58 }
 0x1bd   : > { %770 = vmatmul.msk.f32.vlgmr.msrb.gmra.mxu3 %vm410_vm4, %v766_v30 }
 0x224   : > { %v495_v15 = vpop.permute.xlu1 %494 }
 0x225   : > { %v497_v16 = vsub.f32 %v1109_v20, %v495_v15 }
 0x240   : > { %v484_v63 = vpop.f32.mrf.mxu3 }
 0x241   : > { %v490_v0 = vadd.f32 %v891_v61, %v484_v63 }
 0x243   : > { %v491_v1 = vmul.f32 %v490_v0, %v454_v48  ;;  %602 = vst.msk [vmem:[#allocation3 - $0x3] sm:$0x8] %vm600_vm9, %v490_v0 }
 0x245   : > { %v498_v3 = vadd.f32 0.001, %v491_v1 }
 0x247   : > { %895 = vrsqrt.f32 %v498_v3  ;;  %vm505_vm11 = vweird.f32 %v498_v3 }
 0x24d   : > { %v896_v6 = vpop.eup %895 }
 0x24e   : > { %v500_v7 = vmul.f32 %v896_v6, %v498_v3  ;;  %vm506_vm10 = vweird.f32 %v896_v6 }
 0x24f   : > { %vm507_vm12 = vmor %vm505_vm11, %vm506_vm10 }
 0x250   : > { %v501_v8 = vmul.f32 %v896_v6, %v500_v7 }
 0x252   : > { %v502_v9 = vmul.f32 0.5, %v501_v8 }
 0x254   : > { %v503_v10 = vsub.f32 1.5, %v502_v9 }
 0x256   : > { %v504_v11 = vmul.f32 %v896_v6, %v503_v10 }
 0x258   : > { %v508_v12 = vsel %vm507_vm12, %v896_v6, %v504_v11 }
 0x259   : > { %511 = vperm.xlu1 %888, %v508_v12  }
 0x2cb   : > { %v512_v18 = vpop.permute.xlu1 %511 }
 0x2cc   : > { %v514_v19 = vmul.f32 %v512_v18, %v497_v16 }
 0x2ce   : > { %v519_v21 = vmul.f32 %v892_v17, %v514_v19 }
 0x2d0   : > { %v520_v22 = vmax.f32 %v519_v21, 0.0 }
 0x2d2   : > { %v521_v23 = vpack.c.bf16 %v520_v22, %v520_v22 }
 0x2d4   : > { %594 = vmatmul.bf16.vlgmr.msra.gmra.mxu2 %v521_v23 }
 0x357   : > { %v595_v20 = vpop.f32.mrf.mxu2 }
 0x358   : > { %599 = vst [vmem:[%s214_s14] sm:$0xf] %v595_v20 }
 0x359   : > { %924 = shalt.err (!%p921_p5)
}
 0x35a   : > { %831 = dma.vmem_to_hbm [thread:$0]  (%p1044_p4), %s618_s21, 64, %s620_s22, %s604_s24  }
 0x35f   : > { %v597_v24 = vpop.f32.mrf.mxu2 }
 0x360 PF: > { %p837_p6 = scmp.ge.s32.totalorder %s975_s20, 2  ;;  %s631_s8 = sand.u32 1, %s955_s15  }
 0x361   : > { %s632_s9 = scalar_lea.sflag [#allocation5], %s631_s8 }
 0x362   : > { %p834_p7 = pnand %p837_p6, %p1051_p8 }
 0x364   : > { %p835_p9 = pneg %p834_p7 }
 0x366   : > { %950 = dma.done.wait (%p835_p9), %s632_s9, 64  }
 0x367   : > { %952 = vsyncadd (%p835_p9), %s632_s9, 4294967232  ;;  %s17_s20 = sadd.s32 1, %s975_s20   ;;  %s1194_s15 = smov %s959_s16 }
 0x368   : > { %p14_p10 = scmp.ge.s32.totalorder %s17_s20, 4   ;;  %s1195_s16 = smov %s963_s17 }
 0x369   : > { %s1196_s17 = smov %s1057_s28  ;;  %s1197_s18 = smov %s971_s19 }
 0x36a   : > { %s1198_s19 = smov %s1200_s23  ;;  %16 = sbr.rel (!%p14_p10) target bundleno = 4 (0x4), region = 75 }
 0x36f   :  { %638 = vsyncpa [#allocation5], 1 }
 0x370   :  { %640 = vsyncpa [#allocation5 + $0x1], 1 }

// kernel: audio_subsample_conv_projection.2
= control target key start
LH: loop header
LB: loop body
LE: loop exit
PB: predicated region body
PF: predicated region fallthrough
CT: control target
= control target key end

     0   :  { %s568_s12 = smov 0   ;;  %s570_s13 = smov 0   ;;  %s633_s0 = inlined_call_operand.vmem [shape: bf16[2,8,54], index: 0, kind: input, shape index: {}]   ;;  %s634_s1 = inlined_call_operand.vmem [shape: bf16[54,128], index: 1, kind: input, shape index: {}]   ;;  %s635_s2 = inlined_call_operand.vmem [shape: f32[1,128], index: 2, kind: input, shape index: {}]   ;;  %s636_s3 = inlined_call_operand.vmem [shape: bf16[2,8,128], index: 3, kind: output, shape index: {}]  }
   0x1   :  { %s572_s14 = smov 0  }
   0x2 LB: > { %s25_s15 = sadd.s32 1, %s540_s13  ;;  %p463_p0 = scmp.ge.s32.totalorder %s544_s14, 1  ;;  %s544_s14 = sphi %s572_s14, %s13_s14   ;;  %s540_s13 = sphi %s570_s13, %s638_s13   ;;  %s536_s12 = sphi %s568_s12, %s637_s12  }
   0x3   : > { %p27_p1 = scmp.ge.s32.totalorder %s25_s15, 2  ;;  %p155_p2 = scmp.lt.s32.totalorder %s544_s14, 3 }
   0x5   : > { %s640_s15 = smov (%p27_p1, %s25_s15), 0  ;;  %p156_p3 = pnand %p463_p0, %p155_p2 }
   0x6   : > { %p183_p4 = scmp.lt.s32.totalorder (!%p156_p3), %s536_s12, 1 }
   0x7   : > { %159 = sbr.rel (%p156_p3) target bundleno = 697 (0x2b9), region = 32 }
   0xc   : > { %v212_v0 = vld [vmem:[%s634_s1 + $0x18] sm:$0x7]  ;;  %vm238_vm0 = vcmask 1042432   ;;  %v486_v4 = vld [vmem:[%s634_s1 + $0x10] sm:$0xff]  ;;  %s642_s12 = smov (!%p183_p4, %s536_s12), 1  ;;  %v485_v5 = vld [vmem:[%s634_s1 + $0x8] sm:$0xff]  ;;  %v255_v12 = vlaneseq }
   0xd   : > { %v226_v1 = vunpack.c.l.b16 %v212_v0  ;;  %s464_s22 = sshll.u32 %s642_s12, 2  ;;  %v484_v6 = vld [vmem:[%s634_s1] sm:$0xff]  ;;  %vm234_vm1 = vcmask 441344   ;;  %vm202_vm2 = vcmask 0   ;;  %v546_v11 = vmov 0.0  }
   0xe   : > { %s189_s27 = scalar_lea.vmem %s633_s0, %s464_s22  ;;  %203 = vst.msk [vmem:[#allocation2] sm:$0x1] %vm202_vm2, %v546_v11  ;;  %v256_v13 = vshrl.u32 %v255_v12, 7  ;;  %v258_v14 = vand.u32 127, %v255_v12  ;;  %vm275_vm4 = vcmask 64512   ;;  %v547_v21 = vmov 0   ;;  %s196_s5 = scalar_lea.vmem %s636_s3, %s464_s22 }
   0xf   : > { %v230_v2 = vpack.c.b16 %v226_v1, %v226_v1  ;;  %v205_v7 = vld [vmem:[%s189_s27] sm:$0xf]  ;;  %204 = vst.msk [vmem:[#allocation3] sm:$0x1] %vm202_vm2, %v546_v11  ;;  %513 = vset.pattern.permute.xlu1 %v547_v21  ;;  %514 = vset.pattern.permute.xlu0 %v547_v21  ;;  %vm382_vm9 = vcmask 7175  }
  0x10   : > { %vm259_vm3 = vcmp.le.s32.totalorder %v258_v14, %v256_v13  ;;  %v265_v17 = vadd.s32 1, %v256_v13  ;;  %v517_v58 = vld [vmem:[%s635_s2] ss:$0 sm:$0xff] }
  0x11   : > { %v240_v3 = vsel %vm238_vm0, %v230_v2, 0  ;;  %v479_v15 = vsel %vm259_vm3, 1.0, %v546_v11 }
  0x12   : > { %246 = vmatpush.bf16.msra.mxu0 %v240_v3  ;;  %v266_v18 = vmul.u32 64, %v265_v17 }
  0x14   : > { %v267_v19 = vcvt.s32.f32 %v266_v18 }
  0x15   : > { %v515_v30 = vld [vmem:[#allocation2] ss:$0 sm:$0xff] }
  0x16   : > { %247 = vmatpush.bf16.msra.mxu0 %v486_v4  ;;  %v268_v20 = vmax.f32 %v267_v19, 1.0  ;;  %v516_v44 = vld [vmem:[#allocation3] ss:$0 sm:$0xff] }
  0x18   : > { %518 = vrcp.f32 %v268_v20  ;;  %vm308_vm5 = vweird.f32 %v268_v20  ;;  %v314_v26 = vand.u32 2147483648, %v268_v20  ;;  %v312_v28 = vand.u32 2147483647, %v268_v20 }
  0x1a   : > { %248 = vmatpush.bf16.msra.mxu0 %v485_v5  ;;  %v315_v29 = vor.u32 1.1754944e-38, %v314_v26  ;;  %vm313_vm8 = vcmp.eq.f32.partialorder %v312_v28, 8.507059e+37 }
  0x1e   : > { %249 = vmatpush.bf16.msra.mxu0 %v484_v6  ;;  %v519_v22 = vpop.eup %518 }
  0x1f   : > { %v304_v23 = vmul.f32 %v519_v22, %v268_v20  ;;  %vm309_vm6 = vweird.f32 %v519_v22 }
  0x20   : > { %vm310_vm7 = vmor %vm308_vm5, %vm309_vm6 }
  0x21   : > { %478 = vmatmul.msk.bf16.vlgmr.msra.gmra.mxu0 %vm234_vm1, %v205_v7  ;;  %v305_v24 = vsub.f32 1.0, %v304_v23 }
  0x23   : > { %v306_v25 = vmul.f32 %v519_v22, %v305_v24 }
  0x25   : > { %v307_v27 = vadd.f32 %v519_v22, %v306_v25 }
  0x27   : > { %v311_v31 = vsel %vm310_vm7, %v519_v22, %v307_v27 }
  0x28   : > { %v316_v33 = vsel %vm313_vm8, %v315_v29, %v311_v31 }
  0x9e   : > { %v606_v8 = vpop.f32.mrf.mxu0 }
  0x9f   : > { %269 = vadd.xlane.f32.xlu0 %v606_v8  ;;  %v271_v9 = vmul.f32 %v606_v8, %v606_v8 }
  0xa6   : > { %v253_v10 = vpop.f32.mrf.mxu0 }
  0xa7   : > { %272 = vadd.xlane.f32.xlu0 %v271_v9 }
 0x112   : > { %v270_v16 = vpop.xlane.xlu0 %269 }
 0x113   : > { %294 = vmatpush.msra.mxu1 %v270_v16 }
 0x114   : > { %480 = vmatmul.msk.f32.vlgmr.msra.gmra.mxu1 %vm275_vm4, %v479_v15 }
 0x11a   : > { %v273_v39 = vpop.xlane.xlu0 %272 }
 0x191   : > { %v296_v32 = vpop.f32.mrf.mxu1 }
 0x192   : > { %v302_v34 = vadd.f32 %v515_v30, %v296_v32 }
 0x194   : > { %v317_v35 = vmul.f32 %v316_v33, %v302_v34  ;;  %383 = vst.msk [vmem:[#allocation2 - $0x7] sm:$0x80] %vm382_vm9, %v302_v34 }
 0x196   : > { %353 = vperm.xlu1 %513, %v317_v35   ;;  %v318_v36 = vmul.f32 2.0, %v317_v35  ;;  %v321_v37 = vmul.f32 64.0, %v317_v35 }
 0x198   : > { %v319_v38 = vmul.f32 %v318_v36, %v270_v16  ;;  %v322_v41 = vmul.f32 %v321_v37, %v317_v35 }
 0x19a   : > { %v320_v40 = vsub.f32 %v273_v39, %v319_v38 }
 0x19c   : > { %v323_v42 = vadd.f32 %v322_v41, %v320_v40 }
 0x19e   : > { %v324_v43 = vmax.f32 %v323_v42, 0.0 }
 0x1a0   : > { %341 = vmatpush.msra.mxu2 %v324_v43 }
 0x1a1   : > { %481 = vmatmul.msk.f32.vlgmr.msra.gmra.mxu2 %vm275_vm4, %v479_v15 }
 0x208   : > { %v354_v56 = vpop.permute.xlu1 %353 }
 0x209   : > { %v356_v57 = vsub.f32 %v606_v8, %v354_v56 }
 0x224   : > { %v343_v45 = vpop.f32.mrf.mxu2 }
 0x225   : > { %v349_v46 = vadd.f32 %v516_v44, %v343_v45 }
 0x227   : > { %v350_v47 = vmul.f32 %v349_v46, %v316_v33  ;;  %384 = vst.msk [vmem:[#allocation3 - $0x7] sm:$0x80] %vm382_vm9, %v349_v46 }
 0x229   : > { %v357_v48 = vadd.f32 0.001, %v350_v47 }
 0x22b   : > { %520 = vrsqrt.f32 %v357_v48  ;;  %vm364_vm11 = vweird.f32 %v357_v48 }
 0x231   : > { %v521_v49 = vpop.eup %520 }
 0x232   : > { %v359_v50 = vmul.f32 %v521_v49, %v357_v48  ;;  %vm365_vm10 = vweird.f32 %v521_v49 }
 0x233   : > { %vm366_vm12 = vmor %vm364_vm11, %vm365_vm10 }
 0x234   : > { %v360_v51 = vmul.f32 %v521_v49, %v359_v50 }
 0x236   : > { %v361_v52 = vmul.f32 0.5, %v360_v51 }
 0x238   : > { %v362_v53 = vsub.f32 1.5, %v361_v52 }
 0x23a   : > { %v363_v54 = vmul.f32 %v521_v49, %v362_v53 }
 0x23c   : > { %v367_v55 = vsel %vm366_vm12, %v521_v49, %v363_v54 }
 0x23d   : > { %370 = vperm.xlu1 %513, %v367_v55  }
 0x2af   : > { %v371_v59 = vpop.permute.xlu1 %370 }
 0x2b0   : > { %v373_v60 = vmul.f32 %v371_v59, %v356_v57 }
 0x2b2   : > { %v378_v61 = vmul.f32 %v517_v58, %v373_v60 }
 0x2b4   : > { %v379_v62 = vmax.f32 %v378_v61, 0.0 }
 0x2b6   : > { %v380_v63 = vpack.c.bf16 %v379_v62, %v379_v62 }
 0x2b8   : > { %381 = vst [vmem:[%s196_s5] sm:$0xf] %v380_v63 }
 0x2b9 PF: > { %s13_s14 = sadd.s32 1, %s544_s14   ;;  %s637_s12 = smov %s540_s13 }
 0x2ba   : > { %p10_p5 = scmp.ge.s32.totalorder %s13_s14, 4   ;;  %s638_s13 = smov %s640_s15 }
 0x2bc   :  { %12 = sbr.rel (!%p10_p5) target bundleno = 2 (0x2), region = 66 }

</bundles_post_ra>
